<compile_context>
chip_gen: v7x
topology: tpu7x:2x2x1
jax: 0.10.0
libtpu: 0.0.40
codegen_flags: <defaults>
</compile_context>

<pallas_src>
import functools

import jax
import jax.numpy as jnp
from jax.experimental import pallas as pl
from jax.experimental.pallas import tpu as pltpu


def _round_up(x, m):
    return ((x + m - 1) // m) * m


def _bone_length_loss_kernel(pred_ref, gt_ref, out_ref, *, num_joints):
    J = num_joints

    # Full lane-dense tile loads: (D, J, LANE_TILE).
    p = pred_ref[...].astype(jnp.float32)
    g = gt_ref[...].astype(jnp.float32)

    # Bone vectors: joint j minus joint j-1 (sublane-axis shift, XLU slot).
    bp = p[:, 1:J, :] - p[:, 0:J - 1, :]          # (D, J-1, LT)
    bg = g[:, 1:J, :] - g[:, 0:J - 1, :]

    # Squared bone lengths: cross-vreg adds over the tiny leading D axis.
    sq_p = jnp.sum(bp * bp, axis=0)               # (J-1, LT)
    sq_g = jnp.sum(bg * bg, axis=0)

    # (||bg|| - ||bp||)^2 == sq_g + sq_p - 2*sqrt(sq_g*sq_p): one sqrt per bone
    # per lane (instead of two).  Padded lanes are all-zero -> contribute 0.
    contrib = sq_g + sq_p - 2.0 * jnp.sqrt(sq_g * sq_p)   # (J-1, LT)

    # Reduce the 20 bones inside the step; emit one lane-dense partial row.
    out_ref[...] = jnp.sum(contrib, axis=0, keepdims=True)[None, :, :]


def _bone_length_loss_jnp(pred_f32, gt_f32):
    # Pure-jnp fast path (XLA fuses this fine for tiny batches).
    bp = pred_f32[:, 1:, :] - pred_f32[:, :-1, :]
    bg = gt_f32[:, 1:, :] - gt_f32[:, :-1, :]
    d = jnp.sqrt(jnp.sum(bg * bg, axis=-1)) - jnp.sqrt(jnp.sum(bp * bp, axis=-1))
    return jnp.sum(d * d) / 20.0


def bone_length_loss(pose23d_pred, pose23d_gt, *, small_batch_fallback=False):
    assert pose23d_pred.shape == pose23d_gt.shape, (
        f"BoneLengthLoss error: predicted pose has shape {pose23d_pred.shape}, "
        f"but the groundtruth has {pose23d_gt.shape}"
    )
    B, J, D = pose23d_pred.shape
    assert J == 21, f"BoneLengthLoss expects 21 hand joints, got {J}"
    assert D in (2, 3), f"BoneLengthLoss expects [u,v] or [u,v,d] coords, got {D}"

    # For very small batches the pallas_call dispatch overhead dominates;
    # callers can opt into a fused pure-jnp path (kept off by default so the
    # Pallas kernel is exercised here).
    if small_batch_fallback and B <= 256:
        return _bone_length_loss_jnp(pose23d_pred.astype(jnp.float32),
                                     pose23d_gt.astype(jnp.float32))

    # Layout plumbing (no compute hoisting): (B, J, D) -> (D, J, B) so the
    # batch axis is the lane axis and the joint axis is the sublane axis;
    # zero-pad batch to a lane-dense multiple of the tile (zeros -> 0 loss).
    # TODO(synk): for production, produce/keep the pose tensors in this
    # lane-major layout upstream (or fuse the transpose into the producer) —
    # the standalone transpose+pad roughly doubles HBM traffic for this
    # memory-bound loss.
    p = jnp.transpose(pose23d_pred.astype(jnp.float32), (2, 1, 0))
    g = jnp.transpose(pose23d_gt.astype(jnp.float32), (2, 1, 0))

    MAX_LANE_TILE = 4096  # 2 inputs x 2 pipeline bufs x 288*LT B ~= 4.5 MiB: fits v5e/v6e/v7x defaults
    lane_tile = min(_round_up(B, 128), MAX_LANE_TILE)
    b_pad = _round_up(B, lane_tile)
    if b_pad != B:
        pad = ((0, 0), (0, 0), (0, b_pad - B))
        p = jnp.pad(p, pad)
        g = jnp.pad(g, pad)

    num_tiles = b_pad // lane_tile

    cost = pl.CostEstimate(
        flops=int(b_pad * ((J - 1) * (6 * D + 4) + (J - 2))),
        transcendentals=int((J - 1) * b_pad),
        bytes_accessed=int(2 * J * D * b_pad * 4 + num_tiles * lane_tile * 4),
    )

    partials = pl.pallas_call(
        functools.partial(_bone_length_loss_kernel, num_joints=J),
        out_shape=jax.ShapeDtypeStruct((num_tiles, 1, lane_tile), jnp.float32),
        grid_spec=pltpu.PrefetchScalarGridSpec(
            num_scalar_prefetch=0,
            grid=(num_tiles,),
            in_specs=[
                pl.BlockSpec((D, J, lane_tile), lambda i: (0, 0, i)),
                pl.BlockSpec((D, J, lane_tile), lambda i: (0, 0, i)),
            ],
            out_specs=pl.BlockSpec((1, 1, lane_tile), lambda i: (i, 0, 0)),
        ),
        compiler_params=pltpu.CompilerParams(
            dimension_semantics=("parallel",),  # independent tiles -> v7x uses both TCs
        ),
        cost_estimate=cost,
    )(p, g)

    # Tiny final reduction (<= num_tiles * lane_tile floats) + /20 in the wrapper.
    return jnp.sum(partials) / 20.0


if __name__ == "__main__":
    key = jax.random.PRNGKey(0)
    k1, k2 = jax.random.split(key)

    # Small shapes consistent with the module: B x 21 joints x 3 coords.
    B, J, D = 2, 21, 3
    pred = jax.random.normal(k1, (B, J, D), dtype=jnp.float32)
    gt = jax.random.normal(k2, (B, J, D), dtype=jnp.float32)

    out3 = bone_length_loss(pred, gt)
    jax.block_until_ready(out3)

    # Pure-JAX reference faithful to the PyTorch loop semantics.
    def reference(pp, gg):
        loss = 0.0
        for b in range(pp.shape[0]):
            for finger_idx in range(5):
                for joint_idx in range(finger_idx * 4 + 1, finger_idx * 4 + 5):
                    # (joint_idx == finger_idx never holds -> parent is joint_idx-1)
                    bl_gt = jnp.linalg.norm(gg[b, joint_idx] - gg[b, joint_idx - 1])
                    bl_pr = jnp.linalg.norm(pp[b, joint_idx] - pp[b, joint_idx - 1])
                    loss = loss + (bl_gt - bl_pr) ** 2
        return loss / 20.0

    ref3 = reference(pred, gt)
    assert jnp.allclose(out3, ref3, rtol=2e-5, atol=1e-5), (out3, ref3)

    # Also exercise the 2-D (u, v) image-coordinate variant.
    pred2, gt2 = pred[..., :2], gt[..., :2]
    out2 = bone_length_loss(pred2, gt2)
    jax.block_until_ready(out2)
    ref2 = reference(pred2, gt2)
    assert jnp.allclose(out2, ref2, rtol=2e-5, atol=1e-5), (out2, ref2)

    print("KERNEL_OK")
</pallas_src>

<mosaic_0001>
module attributes {stable_mosaic.version = 11 : i64} {
  func.func @_bone_length_loss_kernel(%arg0: i32, %arg1: memref<3x21x128xf32, #tpu.memory_space<vmem>>, %arg2: memref<3x21x128xf32, #tpu.memory_space<vmem>>, %arg3: memref<1x1x128xf32, #tpu.memory_space<vmem>>) attributes {dimension_semantics = [#tpu.dimension_semantics<parallel>], iteration_bounds = array<i64: 1>, scalar_prefetch = 0 : i64, scratch_operands = 0 : i64, tpu.core_type = #tpu.core_type<tc>, window_params = [{transform_indices = @transform_0, window_bounds = array<i64: 3, 21, 128>}, {transform_indices = @transform_1, window_bounds = array<i64: 3, 21, 128>}, {transform_indices = @transform_2, window_bounds = array<i64: 1, 1, 128>}]} {
    %c0 = arith.constant 0 : index
    %c0_0 = arith.constant 0 : index
    %c0_1 = arith.constant 0 : index
    %0 = vector.load %arg1[%c0, %c0_0, %c0_1] : memref<3x21x128xf32, #tpu.memory_space<vmem>>, vector<3x21x128xf32>
    %c0_2 = arith.constant 0 : index
    %c0_3 = arith.constant 0 : index
    %c0_4 = arith.constant 0 : index
    %1 = vector.load %arg2[%c0_2, %c0_3, %c0_4] : memref<3x21x128xf32, #tpu.memory_space<vmem>>, vector<3x21x128xf32>
    %2 = vector.extract_strided_slice %0 {offsets = [0, 1, 0], sizes = [3, 20, 128], strides = [1, 1, 1]} : vector<3x21x128xf32> to vector<3x20x128xf32>
    %3 = vector.extract_strided_slice %0 {offsets = [0, 0, 0], sizes = [3, 20, 128], strides = [1, 1, 1]} : vector<3x21x128xf32> to vector<3x20x128xf32>
    %4 = arith.subf %2, %3 : vector<3x20x128xf32>
    %5 = vector.extract_strided_slice %1 {offsets = [0, 1, 0], sizes = [3, 20, 128], strides = [1, 1, 1]} : vector<3x21x128xf32> to vector<3x20x128xf32>
    %6 = vector.extract_strided_slice %1 {offsets = [0, 0, 0], sizes = [3, 20, 128], strides = [1, 1, 1]} : vector<3x21x128xf32> to vector<3x20x128xf32>
    %7 = arith.subf %5, %6 : vector<3x20x128xf32>
    %8 = arith.mulf %4, %4 : vector<3x20x128xf32>
    %cst = arith.constant dense<0.000000e+00> : vector<20x128xf32>
    %9 = vector.multi_reduction <add>, %8, %cst [0] : vector<3x20x128xf32> to vector<20x128xf32>
    %10 = arith.mulf %7, %7 : vector<3x20x128xf32>
    %cst_5 = arith.constant dense<0.000000e+00> : vector<20x128xf32>
    %11 = vector.multi_reduction <add>, %10, %cst_5 [0] : vector<3x20x128xf32> to vector<20x128xf32>
    %12 = arith.addf %11, %9 : vector<20x128xf32>
    %13 = arith.mulf %11, %9 : vector<20x128xf32>
    %14 = math.sqrt %13 : vector<20x128xf32>
    %cst_6 = arith.constant 2.000000e+00 : f32
    %15 = vector.broadcast %cst_6 : f32 to vector<20x128xf32>
    %16 = arith.mulf %15, %14 : vector<20x128xf32>
    %17 = arith.subf %12, %16 : vector<20x128xf32>
    %cst_7 = arith.constant dense<0.000000e+00> : vector<128xf32>
    %18 = vector.multi_reduction <add>, %17, %cst_7 [0] : vector<20x128xf32> to vector<128xf32>
    %19 = vector.shape_cast %18 : vector<128xf32> to vector<1x128xf32>
    %20 = vector.shape_cast %19 : vector<1x128xf32> to vector<1x1x128xf32>
    %c0_8 = arith.constant 0 : index
    %c0_9 = arith.constant 0 : index
    %c0_10 = arith.constant 0 : index
    %21 = vector.load %arg3[%c0_8, %c0_9, %c0_10] : memref<1x1x128xf32, #tpu.memory_space<vmem>>, vector<1x1x128xf32>
    tpu.vector_store %arg3[%c0_8, %c0_9, %c0_10], %20 {strides = array<i32>} : memref<1x1x128xf32, #tpu.memory_space<vmem>>, vector<1x1x128xf32>,
    return
  }
  func.func @transform_0(%arg0: i32) -> (i32, i32, i32) {
    %c0_i32 = arith.constant 0 : i32
    %c0_i32_0 = arith.constant 0 : i32
    %c0_i32_1 = arith.constant 0 : i32
    return %c0_i32, %c0_i32_0, %arg0 : i32, i32, i32
  }
  func.func @transform_1(%arg0: i32) -> (i32, i32, i32) {
    %c0_i32 = arith.constant 0 : i32
    %c0_i32_0 = arith.constant 0 : i32
    %c0_i32_1 = arith.constant 0 : i32
    return %c0_i32, %c0_i32_0, %arg0 : i32, i32, i32
  }
  func.func @transform_2(%arg0: i32) -> (i32, i32, i32) {
    %c0_i32 = arith.constant 0 : i32
    %c0_i32_0 = arith.constant 0 : i32
    %c0_i32_1 = arith.constant 0 : i32
    return %arg0, %c0_i32, %c0_i32_0 : i32, i32, i32
  }
}

</mosaic_0001>

<bundles_post_ra>
// kernel: tpu_custom_call.1
= control target key start
LH: loop header
LB: loop body
LE: loop exit
PB: predicated region body
PF: predicated region fallthrough
CT: control target
= control target key end

     0   :  { %7 = vsyncpa [#allocation3], 0  ;;  %s422_s0 = inlined_call_operand.hbm [shape: f32[3,21,128], index: 0, kind: input, shape index: {}]   ;;  %s423_s1 = inlined_call_operand.hbm [shape: f32[3,21,128], index: 1, kind: input, shape index: {}]   ;;  %s424_s2 = inlined_call_operand.hbm [shape: f32[1,1,128], index: 2, kind: output, shape index: {}]  }
   0x1   :  { %8 = vsyncpa [#allocation6], 0 }
   0x2   :  { %9 = vsyncpa [#allocation4], 0  ;;  %s342_s9 = smov [#allocation2]   ;;  %s270_s13 = scalar_lea.hbm %s422_s0, 1152 }
   0x3   :  { %s15_s10 = sshll.u32 %s342_s9, 4  ;;  %p271_p0 = scmp.ne.s32.totalorder %s422_s0, %s270_s13  ;;  %s16_s10 = int_to_ptr.vmem [resolvable:$true] %s15_s10 }
   0x4   :  { %p274_p1 = scmp.lt.u32.totalorder %s270_s13, %s422_s0 }
   0x6   :  { %p276_p2 = pnand %p274_p1, %p271_p0 }
   0x8   :  { %279 = shalt.err (!%p276_p2)
}
   0x9   :  { %s280_s18 = scalar_lea.vmem %s16_s10, 1152  ;;  %p285_p4 = scmp.lt.s32.totalorder %s16_s10, %s16_s10 }
   0xa   :  { %p281_p3 = scmp.ne.s32.totalorder %s16_s10, %s280_s18  ;;  %p286_p5 = scmp.lt.s32.totalorder %s280_s18, %s280_s18 }
   0xc   :  { %p287_p6 = por %p286_p5, %p285_p4 }
   0xe   :  { %p288_p7 = pnand %p287_p6, %p281_p3 }
  0x10   :  { %291 = shalt.err (!%p288_p7)
}
  0x11   :  { %s343_s19 = smov 128   ;;  %s344_s20 = smov 8  }
  0x12   :  { %21 = dma.hbm_to_vmem [thread:$0]  %s422_s0, 1152, %s16_s10, [#allocation3], %s343_s19, %s343_s19, %s344_s20  }
  0x13   :  { %s345_s23 = smov [#allocation5]   ;;  %s292_s27 = scalar_lea.hbm %s423_s1, 1152 }
  0x14   :  { %s27_s24 = sshll.u32 %s345_s23, 4  ;;  %p293_p8 = scmp.ne.s32.totalorder %s423_s1, %s292_s27  ;;  %s28_s24 = int_to_ptr.vmem [resolvable:$true] %s27_s24 }
  0x15   :  { %p296_p9 = scmp.lt.u32.totalorder %s292_s27, %s423_s1 }
  0x17   :  { %p298_p10 = pnand %p296_p9, %p293_p8 }
  0x19   :  { %301 = shalt.err (!%p298_p10)
}
  0x1a   :  { %s302_s4 = scalar_lea.vmem %s28_s24, 1152  ;;  %p307_p12 = scmp.lt.s32.totalorder %s28_s24, %s28_s24 }
  0x1b   :  { %p303_p11 = scmp.ne.s32.totalorder %s28_s24, %s302_s4  ;;  %p308_p13 = scmp.lt.s32.totalorder %s302_s4, %s302_s4 }
  0x1d   :  { %p309_p0 = por %p308_p13, %p307_p12 }
  0x1f   :  { %p310_p1 = pnand %p309_p0, %p303_p11 }
  0x21   :  { %313 = shalt.err (!%p310_p1)
}
  0x22   :  { %33 = dma.hbm_to_vmem [thread:$0]  %s423_s1, 1152, %s28_s24, [#allocation6], %s343_s19, %s343_s19, %s344_s20  }
  0x23   :  { %336 = dma.done.wait [#allocation3], 1152  }
  0x24   :  { %337 = vsyncadd [#allocation3], 4294966144 }
  0x25   :  { %338 = dma.done.wait [#allocation6], 1152  }
  0x26   :  { %339 = vsyncadd [#allocation6], 4294966144  ;;  %v40_v0 = vld [vmem:[#allocation2] sm:$0xff]  ;;  %v41_v1 = vld [vmem:[#allocation2 + $0x8] sm:$0xff]  ;;  %vm67_vm0 = vcmask 1040384   ;;  %vm152_vm1 = vcmask 1047553  }
  0x27   :  { %v42_v2 = vld [vmem:[#allocation2 + $0x10] sm:$0x1f]  ;;  %v43_v3 = vld [vmem:[#allocation2 + $0x18] sm:$0xff]  ;;  %v44_v4 = vld [vmem:[#allocation2 + $0x20] sm:$0xff]  ;;  %v68_v6 = vrot.slane %v40_v0, 7  ;;  %v69_v7 = vrot.slane %v41_v1, 7 }
  0x28   :  { %v45_v5 = vld [vmem:[#allocation2 + $0x28] sm:$0x1f]  ;;  %v46_v8 = vld [vmem:[#allocation2 + $0x30] sm:$0xff]  ;;  %v47_v9 = vld [vmem:[#allocation2 + $0x38] sm:$0xff]  ;;  %v71_v11 = vrot.slane %v42_v2, 7  ;;  %v73_v12 = vrot.slane %v43_v3, 7 }
  0x29   :  { %v48_v10 = vld [vmem:[#allocation2 + $0x40] sm:$0x1f]  ;;  %v70_v13 = vsel %vm67_vm0, %v68_v6, %v69_v7  ;;  %v74_v14 = vrot.slane %v44_v4, 7  ;;  %v76_v15 = vrot.slane %v45_v5, 7  ;;  %v49_v16 = vld [vmem:[#allocation5] sm:$0xff]  ;;  %v50_v17 = vld [vmem:[#allocation5 + $0x8] sm:$0xff]  ;;  %v92_v27 = vsub.f32 %v40_v0, %v68_v6 }
  0x2a   :  { %v72_v18 = vsel %vm67_vm0, %v69_v7, %v71_v11  ;;  %v78_v19 = vrot.slane %v46_v8, 7  ;;  %v79_v20 = vrot.slane %v47_v9, 7  ;;  %v51_v21 = vld [vmem:[#allocation5 + $0x10] sm:$0x1f]  ;;  %v52_v22 = vld [vmem:[#allocation5 + $0x18] sm:$0xff]  ;;  %v53_v23 = vld [vmem:[#allocation5 + $0x20] sm:$0xff]  ;;  %v93_v32 = vsub.f32 %v41_v1, %v70_v13 }
  0x2b   :  { %v75_v24 = vsel %vm67_vm0, %v73_v12, %v74_v14  ;;  %v77_v25 = vsel %vm67_vm0, %v74_v14, %v76_v15  ;;  %v81_v26 = vrot.slane %v48_v10, 7  ;;  %vm160_vm2 = vcmask 1044480   ;;  %v54_v28 = vld [vmem:[#allocation5 + $0x28] sm:$0x1f]  ;;  %v55_v29 = vld [vmem:[#allocation5 + $0x30] sm:$0xff]  ;;  %v56_v30 = vld [vmem:[#allocation5 + $0x38] sm:$0xff] }
  0x2c   :  { %v80_v31 = vsel %vm67_vm0, %v78_v19, %v79_v20  ;;  %v94_v33 = vsub.f32 %v42_v2, %v72_v18  ;;  %v95_v34 = vsub.f32 %v43_v3, %v73_v12  ;;  %v57_v35 = vld [vmem:[#allocation5 + $0x40] sm:$0x1f]  ;;  %v96_v37 = vsub.f32 %v44_v4, %v75_v24  ;;  %s346_s1 = smov [#allocation7]  }
  0x2d   :  { %v82_v36 = vsel %vm67_vm0, %v79_v20, %v81_v26  ;;  %v97_v38 = vsub.f32 %v45_v5, %v77_v25  ;;  %v110_v39 = vrot.slane %v49_v16, 7  ;;  %v98_v40 = vsub.f32 %v46_v8, %v78_v19  ;;  %s249_s6 = sshll.u32 %s346_s1, 4  ;;  %s250_s6 = int_to_ptr.vmem [resolvable:$true] %s249_s6 }
  0x2e   :  { %v111_v41 = vrot.slane %v50_v17, 7  ;;  %v113_v42 = vrot.slane %v51_v21, 7  ;;  %v115_v43 = vrot.slane %v52_v22, 7  ;;  %v116_v44 = vrot.slane %v53_v23, 7  ;;  %s314_s7 = scalar_lea.vmem %s250_s6, 16  ;;  %s318_s8 = scalar_lea.vmem %s250_s6, 32 }
  0x2f   :  { %v118_v45 = vrot.slane %v54_v28, 7  ;;  %v120_v46 = vrot.slane %v55_v29, 7  ;;  %v121_v47 = vrot.slane %v56_v30, 7  ;;  %v99_v48 = vsub.f32 %v47_v9, %v80_v31  ;;  %p315_p2 = scmp.ne.s32.totalorder %s250_s6, %s314_s7  ;;  %p319_p3 = scmp.lt.s32.totalorder %s250_s6, %s250_s6 }
  0x30   :  { %v112_v49 = vsel %vm67_vm0, %v110_v39, %v111_v41  ;;  %v114_v50 = vsel %vm67_vm0, %v111_v41, %v113_v42  ;;  %v123_v51 = vrot.slane %v57_v35, 7  ;;  %v100_v52 = vsub.f32 %v48_v10, %v82_v36  ;;  %p320_p4 = scmp.lt.s32.totalorder %s318_s8, %s314_s7 }
  0x31   :  { %v117_v53 = vsel %vm67_vm0, %v115_v43, %v116_v44  ;;  %v119_v54 = vsel %vm67_vm0, %v116_v44, %v118_v45  ;;  %v134_v55 = vsub.f32 %v49_v16, %v110_v39  ;;  %v122_v56 = vsel %vm67_vm0, %v120_v46, %v121_v47 }
  0x32   :  { %v124_v57 = vsel %vm67_vm0, %v121_v47, %v123_v51  ;;  %v135_v58 = vsub.f32 %v50_v17, %v112_v49  ;;  %v136_v59 = vsub.f32 %v51_v21, %v114_v50  ;;  %v137_v60 = vsub.f32 %v52_v22, %v115_v43  ;;  %p321_p5 = por %p320_p4, %p319_p3 }
  0x33   :  { %v138_v61 = vsub.f32 %v53_v23, %v117_v53  ;;  %v139_v62 = vsub.f32 %v54_v28, %v119_v54  ;;  %v140_v63 = vsub.f32 %v55_v29, %v120_v46  ;;  %v143_v0 = vmul.f32 %v92_v27, %v92_v27 }
  0x34   :  { %v144_v1 = vmul.f32 %v93_v32, %v93_v32  ;;  %v145_v2 = vmul.f32 %v94_v33, %v94_v33  ;;  %v146_v3 = vmul.f32 %v95_v34, %v95_v34  ;;  %v141_v4 = vsub.f32 %v56_v30, %v122_v56  ;;  %p322_p6 = pnand %p321_p5, %p315_p2 }
  0x35   :  { %v147_v5 = vmul.f32 %v96_v37, %v96_v37  ;;  %v148_v6 = vmul.f32 %v97_v38, %v97_v38  ;;  %v149_v7 = vmul.f32 %v98_v40, %v98_v40  ;;  %v151_v8 = vmul.f32 %v100_v52, %v100_v52 }
  0x36   :  { %v153_v9 = vsel %vm152_vm1, %v143_v0, 0.0  ;;  %v154_v10 = vsel %vm152_vm1, %v146_v3, 0.0  ;;  %v161_v11 = vsel %vm160_vm2, %v145_v2, 0.0  ;;  %v142_v12 = vsub.f32 %v57_v35, %v124_v57 }
  0x37   :  { %v155_v13 = vadd.f32 %v154_v10, %v153_v9  ;;  %v156_v14 = vsel %vm152_vm1, %v149_v7, 0.0  ;;  %v162_v15 = vsel %vm160_vm2, %v148_v6, 0.0  ;;  %v150_v16 = vmul.f32 %v99_v48, %v99_v48 }
  0x38   :  { %v158_v17 = vadd.f32 %v147_v5, %v144_v1  ;;  %v166_v18 = vmul.f32 %v134_v55, %v134_v55  ;;  %v167_v19 = vmul.f32 %v135_v58, %v135_v58  ;;  %v163_v20 = vadd.f32 %v162_v15, %v161_v11 }
  0x39   :  { %v164_v21 = vsel %vm160_vm2, %v151_v8, 0.0  ;;  %v168_v22 = vmul.f32 %v136_v59, %v136_v59  ;;  %v169_v23 = vmul.f32 %v137_v60, %v137_v60  ;;  %v157_v24 = vadd.f32 %v156_v14, %v155_v13 }
  0x3a   :  { %v170_v25 = vmul.f32 %v138_v61, %v138_v61  ;;  %v171_v26 = vmul.f32 %v139_v62, %v139_v62  ;;  %v172_v27 = vmul.f32 %v140_v63, %v140_v63  ;;  %v173_v28 = vmul.f32 %v141_v4, %v141_v4 }
  0x3b   :  { %v174_v29 = vmul.f32 %v142_v12, %v142_v12  ;;  %v175_v30 = vsel %vm152_vm1, %v166_v18, 0.0  ;;  %v176_v31 = vsel %vm152_vm1, %v169_v23, 0.0  ;;  %v182_v35 = vsel %vm160_vm2, %v168_v22, 0.0 }
  0x3c   :  { %v177_v32 = vadd.f32 %v176_v31, %v175_v30  ;;  %v178_v33 = vsel %vm152_vm1, %v172_v27, 0.0  ;;  %v180_v34 = vadd.f32 %v170_v25, %v167_v19  ;;  %v159_v36 = vadd.f32 %v158_v17, %v150_v16 }
  0x3d   :  { %v183_v37 = vsel %vm160_vm2, %v171_v26, 0.0  ;;  %v185_v38 = vsel %vm160_vm2, %v174_v29, 0.0  ;;  %v165_v39 = vadd.f32 %v164_v21, %v163_v20  ;;  %vm223_vm9 = vcmask 1046528  }
  0x3e   :  { %v179_v40 = vadd.f32 %v178_v33, %v177_v32  ;;  %v181_v41 = vadd.f32 %v180_v34, %v173_v28  ;;  %v184_v42 = vadd.f32 %v183_v37, %v182_v35  ;;  %vm233_vm10 = vcmask 1043456  }
  0x40   :  { %v186_v43 = vadd.f32 %v185_v38, %v184_v42  ;;  %v190_v44 = vmul.f32 %v179_v40, %v157_v24  ;;  %v191_v45 = vmul.f32 %v181_v41, %v159_v36  ;;  %v187_v55 = vadd.f32 %v179_v40, %v157_v24 }
  0x41   :  { %v188_v58 = vadd.f32 %v181_v41, %v159_v36 }
  0x42   :  { %v192_v46 = vmul.f32 %v186_v43, %v165_v39  ;;  %264 = vrsqrt.f32 %v190_v44  ;;  %vm195_vm3 = vcmp.eq.f32.partialorder %v190_v44, inf  ;;  %v198_v48 = vand.u32 2147483648, %v190_v44 }
  0x43   :  { %266 = vrsqrt.f32 %v191_v45  ;;  %vm197_vm4 = vcmp.eq.f32.partialorder %v190_v44, 0.0  ;;  %vm202_vm5 = vcmp.eq.f32.partialorder %v191_v45, inf  ;;  %v205_v51 = vand.u32 2147483648, %v191_v45 }
  0x44   :  { %268 = vrsqrt.f32 %v192_v46  ;;  %vm204_vm6 = vcmp.eq.f32.partialorder %v191_v45, 0.0  ;;  %vm209_vm7 = vcmp.eq.f32.partialorder %v192_v46, inf  ;;  %v212_v54 = vand.u32 2147483648, %v192_v46 }
  0x45   :  { %vm211_vm8 = vcmp.eq.f32.partialorder %v192_v46, 0.0  ;;  %v189_v61 = vadd.f32 %v186_v43, %v165_v39 }
  0x4c   :  { %v265_v47 = vpop.eup %264 }
  0x4d   :  { %v267_v49 = vpop.eup %266  ;;  %v194_v50 = vmul.f32 %v265_v47, %v190_v44 }
  0x4e   :  { %v269_v52 = vpop.eup %268  ;;  %v201_v53 = vmul.f32 %v267_v49, %v191_v45 }
  0x4f   :  { %v196_v56 = vsel %vm195_vm3, %v190_v44, %v194_v50  ;;  %v208_v57 = vmul.f32 %v269_v52, %v192_v46 }
  0x50   :  { %v199_v59 = vsel %vm197_vm4, %v198_v48, %v196_v56  ;;  %v203_v60 = vsel %vm202_vm5, %v191_v45, %v201_v53 }
  0x51   :  { %v206_v62 = vsel %vm204_vm6, %v205_v51, %v203_v60  ;;  %v210_v63 = vsel %vm209_vm7, %v192_v46, %v208_v57  ;;  %v214_v0 = vmul.f32 2.0, %v199_v59 }
  0x52   :  { %v213_v1 = vsel %vm211_vm8, %v212_v54, %v210_v63  ;;  %v215_v2 = vmul.f32 2.0, %v206_v62 }
  0x53   :  { %v216_v3 = vmul.f32 2.0, %v213_v1  ;;  %v217_v4 = vsub.f32 %v187_v55, %v214_v0 }
  0x54   :  { %v218_v5 = vsub.f32 %v188_v58, %v215_v2 }
  0x55   :  { %v219_v6 = vsub.f32 %v189_v61, %v216_v3  ;;  %v224_v7 = vrot.slane %v217_v4, 1 }
  0x56   :  { %v225_v8 = vrot.slane %v218_v5, 1 }
  0x57   :  { %v227_v9 = vrot.slane %v219_v6, 1 }
  0x58   :  { %v226_v10 = vsel %vm223_vm9, %v224_v7, %v225_v8 }
  0x59   :  { %v228_v11 = vsel %vm223_vm9, %v225_v8, %v227_v9  ;;  %v234_v12 = vsel %vm233_vm10, %v227_v9, 0.0 }
  0x5a   :  { %v232_v13 = vadd.f32 %v228_v11, %v226_v10 }
  0x5c   :  { %v235_v14 = vadd.f32 %v234_v12, %v232_v13 }
  0x5e   :  { %v236_v15 = vrot.slane %v235_v14, 4 }
  0x60   :  { %v237_v16 = vadd.f32 %v236_v15, %v235_v14 }
  0x62   :  { %v238_v17 = vrot.slane %v237_v16, 2 }
  0x64   :  { %v239_v18 = vadd.f32 %v238_v17, %v237_v16 }
  0x66   :  { %v240_v19 = vrot.slane %v239_v18, 1 }
  0x68   :  { %v241_v20 = vadd.f32 %v240_v19, %v239_v18 }
  0x6a   :  { %242 = vst [vmem:[#allocation7] sm:$0x1] %v241_v20 }
  0x6b   :  { %325 = shalt.err (!%p322_p6)
}
  0x6c   :  { %s326_s11 = scalar_lea.hbm %s424_s2, 16 }
  0x6d   :  { %p327_p7 = scmp.ne.s32.totalorder %s424_s2, %s326_s11  ;;  %p330_p8 = scmp.lt.u32.totalorder %s326_s11, %s424_s2 }
  0x6f   :  { %p332_p9 = pnand %p330_p8, %p327_p7 }
  0x71   :  { %335 = shalt.err (!%p332_p9)
}
  0x72   :  { %252 = dma.vmem_to_hbm [thread:$0]  %s250_s6, 16, %s424_s2, [#allocation4]  }
  0x73   :  { %340 = dma.done.wait [#allocation4], 16  }
  0x74   :  { %341 = vsyncadd [#allocation4], 4294967280 }
  0x75   :  { %256 = vsyncpa [#allocation3], 1 }
  0x76   :  { %257 = vsyncpa [#allocation6], 1 }
  0x77   :  { %258 = vsyncpa [#allocation4], 1 }

</bundles_post_ra>
